<compile_context>
chip_gen: v7x
topology: tpu7x:2x2x1
jax: 0.10.0
libtpu: 0.0.40
codegen_flags: <defaults>
</compile_context>

<pallas_src>
import functools

import jax
import jax.numpy as jnp
from jax import lax
from jax.experimental import pallas as pl
from jax.experimental.pallas import tpu as pltpu


def _round_up(x, m):
    return ((x + m - 1) // m) * m


def _fire_kernel(ids_ref, x_ref, ws_ref, bs_ref, wc_ref, b1_ref, w3_ref,
                 b3_ref, o_ref, *, height, width, b_tile):
    # ids_ref: (2, HWp)  int32  [row ids ; col ids] of each flattened pixel
    # x_ref:   (B_tile, Cin, HWp) input images, channel-first, HW flattened
    # ws_ref:  (Cs, Cin)   bf16  squeeze 1x1 weight (BN folded)
    # bs_ref:  (Cs, 1)     f32
    # wc_ref:  (2*Co2, Cs) bf16  [expand-1x1 weight ; 3x3 centre tap] stacked
    # b1_ref:  (Co2, 1)    f32
    # w3_ref:  (9, Co2, Cs) bf16 3x3 taps, t = ky*3 + kx (BN folded)
    # b3_ref:  (Co2, 1)    f32
    # o_ref:   (B_tile, 2*Co2, HWp)
    H, W = height, width
    HWp = x_ref.shape[-1]
    Co2 = b1_ref.shape[0]

    row = ids_ref[0:1, :]                       # (1, HWp) int32
    col = ids_ref[1:2, :]                       # (1, HWp) int32

    # Boundary masks implementing padding=1 for the shifted taps.
    up_ok = row > 0
    down_ok = row < (H - 1)
    left_ok = col > 0
    right_ok = col < (W - 1)

    ws = ws_ref[...]
    wc = wc_ref[...]
    bs = bs_ref[...]
    b1 = b1_ref[...]
    b3 = b3_ref[...]

    def one_image(b, carry):
        # ---- squeeze: 1x1 conv as (Cs,Cin)@(Cin,HWp), folded BN, ReLU ----
        x_bf = x_ref[b].astype(jnp.bfloat16)
        s = jnp.dot(ws, x_bf, preferred_element_type=jnp.float32) + bs
        s = jnp.maximum(s, 0.0)                               # (Cs, HWp) f32
        s_bf = s.astype(jnp.bfloat16)

        # ---- expand-1x1 + 3x3 centre tap fused: (2*Co2,Cs)@(Cs,HWp) ----
        acc = jnp.dot(wc, s_bf, preferred_element_type=jnp.float32)

        # ---- remaining 8 taps: XLU roll + mask + accumulation matmul ----
        extra = None
        for ky in range(3):
            for kx in range(3):
                dy, dx = ky - 1, kx - 1
                if dy == 0 and dx == 0:
                    continue                    # centre tap already in `acc`
                k = dy * W + dx
                shift = (-k) % HWp              # static, non-negative
                # win[p] = s[p + k]  (jnp.roll semantics with shift = -k)
                win = s if shift == 0 else pltpu.roll(s, shift, axis=1)
                mask = None
                if dy < 0:
                    mask = up_ok
                elif dy > 0:
                    mask = down_ok
                if dx < 0:
                    mask = left_ok if mask is None else jnp.logical_and(mask, left_ok)
                elif dx > 0:
                    mask = right_ok if mask is None else jnp.logical_and(mask, right_ok)
                win = jnp.where(mask, win, 0.0).astype(jnp.bfloat16)
                d = jnp.dot(w3_ref[ky * 3 + kx], win,
                            preferred_element_type=jnp.float32)   # (Co2, HWp)
                extra = d if extra is None else extra + d

        e1 = jnp.maximum(acc[:Co2, :] + b1, 0.0)
        e3 = jnp.maximum(acc[Co2:, :] + extra + b3, 0.0)
        o_ref[b, pl.ds(0, Co2), :] = e1.astype(o_ref.dtype)
        o_ref[b, pl.ds(Co2, Co2), :] = e3.astype(o_ref.dtype)
        return carry

    lax.fori_loop(0, b_tile, one_image, 0, unroll=True)


def fire_pallas(x_nchw, params):
    """x_nchw: (N, Cin, H, W). Returns (N, 2*Co2, H, W) in x's dtype."""
    ws, bs, wc, b1, w3, b3 = params
    N, Cin, H, W = x_nchw.shape
    HW = H * W
    Cs = ws.shape[0]
    Co2 = b1.shape[0]
    Cout = 2 * Co2

    # Lane-pad HW to a multiple of 128: unmasked stores, aligned rolls.
    HWp = _round_up(HW, 128)
    x_flat = x_nchw.reshape(N, Cin, HW)
    if HWp != HW:
        x_flat = jnp.pad(x_flat, ((0, 0), (0, 0), (0, HWp - HW)))

    # Flat-pixel row/col ids (padding lanes get ids >= H*W; their outputs are
    # discarded, and masked taps never leak padding into valid pixels).
    flat = jnp.arange(HWp, dtype=jnp.int32)
    ids = jnp.stack([flat // W, flat % W], axis=0)            # (2, HWp) int32

    # Batch folding: B_tile images / grid step (amortize per-step overhead,
    # bigger DMAs), capped so the grid keeps >= 2 steps when N allows.
    itemsize = jnp.dtype(x_nchw.dtype).itemsize
    bytes_per_img = (Cin + Cout) * HWp * itemsize
    B_tile = max(1, min(N, (1 << 20) // max(bytes_per_img, 1)))
    if N >= 2:
        B_tile = min(B_tile, max(1, N // 2))
    Np = _round_up(N, B_tile)
    if Np != N:
        x_flat = jnp.pad(x_flat, ((0, Np - N), (0, 0), (0, 0)))

    # TODO(synk): for large-HW stages (e.g. 55x55) add a row-tiled "parallel"
    # grid axis with a 1-row halo so per-step working sets stay small on v7x.

    kernel = functools.partial(_fire_kernel, height=H, width=W, b_tile=B_tile)
    const = lambda a: pl.BlockSpec(a.shape, lambda n: (0,) * a.ndim)

    # VMEM budget (v7x: 64 MiB physical / 32 MiB default scoped): only raise
    # the limit when the estimated per-step working set needs it.
    est = (2 * B_tile * (Cin + Cout) * HWp * itemsize            # I/O, 2-buf
           + (ws.size + wc.size + w3.size) * 2                   # bf16 weights
           + (bs.size + b1.size + b3.size) * 4 + ids.size * 4
           + (3 * Cs + 4 * Co2) * HWp * 4)                       # live values
    cp_kwargs = dict(dimension_semantics=("parallel",))
    if est > 24 * 1024 * 1024:
        cp_kwargs["vmem_limit_bytes"] = min(2 * est, 64 * 1024 * 1024)

    out_flat = pl.pallas_call(
        kernel,
        out_shape=jax.ShapeDtypeStruct((Np, Cout, HWp), x_nchw.dtype),
        grid_spec=pltpu.PrefetchScalarGridSpec(
            num_scalar_prefetch=0,
            grid=(Np // B_tile,),
            in_specs=[
                const(ids),
                pl.BlockSpec((B_tile, Cin, HWp), lambda n: (n, 0, 0)),
                const(ws), const(bs), const(wc), const(b1), const(w3), const(b3),
            ],
            out_specs=pl.BlockSpec((B_tile, Cout, HWp), lambda n: (n, 0, 0)),
        ),
        compiler_params=pltpu.CompilerParams(**cp_kwargs),
    )(ids, x_flat, ws, bs, wc, b1, w3, b3)

    return out_flat[:N, :, :HW].reshape(N, Cout, H, W)


# ---------------------------------------------------------------------------
# Parameters: PyTorch-shaped (OIHW) conv+BN params, BN (eval mode) folded to
# per-channel scale/bias, then converted to kernel layout.
# ---------------------------------------------------------------------------
def _fold_bn(conv_w, conv_b, gamma, beta, mean, var, eps=1e-5):
    scale = gamma / jnp.sqrt(var + eps)
    w = conv_w * scale[:, None, None, None]
    b = (conv_b - mean) * scale + beta
    return w, b


def make_fire_params(key, in_channel, out_channel, squeeze_channel):
    co2 = out_channel // 2
    ks = jax.random.split(key, 6)

    def conv_init(k, cout, cin, kh, kw):
        fan_in = cin * kh * kw
        bound = 1.0 / jnp.sqrt(fan_in)
        kw_, kb_ = jax.random.split(k)
        w = jax.random.uniform(kw_, (cout, cin, kh, kw), jnp.float32, -bound, bound)
        b = jax.random.uniform(kb_, (cout,), jnp.float32, -bound, bound)
        return w, b

    def bn_init(k, c):
        k1, k2, k3 = jax.random.split(k, 3)
        gamma = 1.0 + 0.1 * jax.random.normal(k1, (c,), jnp.float32)
        beta = 0.1 * jax.random.normal(k2, (c,), jnp.float32)
        mean = 0.05 * jax.random.normal(k3, (c,), jnp.float32)
        var = jnp.ones((c,), jnp.float32) * 1.3
        return gamma, beta, mean, var

    wsq, bsq = conv_init(ks[0], squeeze_channel, in_channel, 1, 1)
    w1, b1 = conv_init(ks[1], co2, squeeze_channel, 1, 1)
    w3, b3 = conv_init(ks[2], co2, squeeze_channel, 3, 3)
    bn_s = bn_init(ks[3], squeeze_channel)
    bn_1 = bn_init(ks[4], co2)
    bn_3 = bn_init(ks[5], co2)

    wsq_f, bsq_f = _fold_bn(wsq, bsq, *bn_s)
    w1_f, b1_f = _fold_bn(w1, b1, *bn_1)
    w3_f, b3_f = _fold_bn(w3, b3, *bn_3)

    torch_params = (wsq_f, bsq_f, w1_f, b1_f, w3_f, b3_f)

    # Kernel layouts:
    ws_k = wsq_f[:, :, 0, 0].astype(jnp.bfloat16)                  # (Cs, Cin)
    bs_k = bsq_f[:, None]                                          # (Cs, 1)
    # expand-1x1 weight stacked with the 3x3 centre tap -> one MXU pass.
    wc_k = jnp.concatenate([w1_f[:, :, 0, 0], w3_f[:, :, 1, 1]],
                           axis=0).astype(jnp.bfloat16)            # (2*Co2, Cs)
    b1_k = b1_f[:, None]                                           # (Co2, 1)
    w3_k = jnp.transpose(w3_f, (2, 3, 0, 1)).reshape(
        9, co2, squeeze_channel).astype(jnp.bfloat16)              # (9, Co2, Cs)
    b3_k = b3_f[:, None]                                           # (Co2, 1)

    return torch_params, (ws_k, bs_k, wc_k, b1_k, w3_k, b3_k)


def fire_reference(x, torch_params):
    """Pure-JAX NCHW f32 reference mirroring the PyTorch forward (eval BN)."""
    wsq, bsq, w1, b1, w3, b3 = torch_params
    dn = ("NCHW", "OIHW", "NCHW")

    def conv(x, w, pad):
        return lax.conv_general_dilated(x, w, (1, 1), pad, dimension_numbers=dn)

    s = jax.nn.relu(conv(x, wsq, "VALID") + bsq[None, :, None, None])
    e1 = jax.nn.relu(conv(s, w1, "VALID") + b1[None, :, None, None])
    e3 = jax.nn.relu(conv(s, w3, ((1, 1), (1, 1))) + b3[None, :, None, None])
    return jnp.concatenate([e1, e3], axis=1)


if __name__ == "__main__":
    in_channel, out_channel, squeeze_channel = 8, 16, 8
    N, H, W = 2, 16, 16

    key = jax.random.PRNGKey(0)
    kx, kp = jax.random.split(key)
    x = jax.random.normal(kx, (N, in_channel, H, W), jnp.float32)

    torch_params, kern_params = make_fire_params(
        kp, in_channel, out_channel, squeeze_channel)

    out = fire_pallas(x, kern_params)
    out = jax.block_until_ready(out)

    ref = fire_reference(x, torch_params)
    assert out.shape == (N, out_channel, H, W), out.shape
    max_err = float(jnp.max(jnp.abs(out - ref)))
    # bf16 MXU operands (f32 accumulation) => looser tolerance than pure f32.
    assert jnp.allclose(out, ref, atol=5e-2, rtol=5e-2), max_err

    print("KERNEL_OK")
</pallas_src>

<mosaic_0001>
module attributes {stable_mosaic.version = 11 : i64} {
  func.func @_fire_kernel(%arg0: i32, %arg1: memref<2x256xi32, #tpu.memory_space<vmem>>, %arg2: memref<1x8x256xf32, #tpu.memory_space<vmem>>, %arg3: memref<8x8xbf16, #tpu.memory_space<vmem>>, %arg4: memref<8x1xf32, #tpu.memory_space<vmem>>, %arg5: memref<16x8xbf16, #tpu.memory_space<vmem>>, %arg6: memref<8x1xf32, #tpu.memory_space<vmem>>, %arg7: memref<9x8x8xbf16, #tpu.memory_space<vmem>>, %arg8: memref<8x1xf32, #tpu.memory_space<vmem>>, %arg9: memref<1x16x256xf32, #tpu.memory_space<vmem>>) attributes {dimension_semantics = [#tpu.dimension_semantics<parallel>], iteration_bounds = array<i64: 2>, scalar_prefetch = 0 : i64, scratch_operands = 0 : i64, tpu.core_type = #tpu.core_type<tc>, window_params = [{pipeline_mode = #tpu.pipeline_mode<synchronous>, transform_indices = @transform_0, window_bounds = array<i64: 2, 256>}, {transform_indices = @transform_1, window_bounds = array<i64: 1, 8, 256>}, {pipeline_mode = #tpu.pipeline_mode<synchronous>, transform_indices = @transform_2, window_bounds = array<i64: 8, 8>}, {pipeline_mode = #tpu.pipeline_mode<synchronous>, transform_indices = @transform_3, window_bounds = array<i64: 8, 1>}, {pipeline_mode = #tpu.pipeline_mode<synchronous>, transform_indices = @transform_4, window_bounds = array<i64: 16, 8>}, {pipeline_mode = #tpu.pipeline_mode<synchronous>, transform_indices = @transform_5, window_bounds = array<i64: 8, 1>}, {pipeline_mode = #tpu.pipeline_mode<synchronous>, transform_indices = @transform_6, window_bounds = array<i64: 9, 8, 8>}, {pipeline_mode = #tpu.pipeline_mode<synchronous>, transform_indices = @transform_7, window_bounds = array<i64: 8, 1>}, {transform_indices = @transform_8, window_bounds = array<i64: 1, 16, 256>}]} {
    %c0 = arith.constant 0 : index
    %c0_0 = arith.constant 0 : index
    %0 = vector.load %arg1[%c0, %c0_0] : memref<2x256xi32, #tpu.memory_space<vmem>>, vector<1x256xi32>
    %c1 = arith.constant 1 : index
    %c0_1 = arith.constant 0 : index
    %1 = vector.load %arg1[%c1, %c0_1] : memref<2x256xi32, #tpu.memory_space<vmem>>, vector<1x256xi32>
    %c0_i32 = arith.constant 0 : i32
    %2 = vector.broadcast %c0_i32 : i32 to vector<1x256xi32>
    %3 = arith.cmpi sgt, %0, %2 : vector<1x256xi32>
    %c15_i32 = arith.constant 15 : i32
    %4 = vector.broadcast %c15_i32 : i32 to vector<1x256xi32>
    %5 = arith.cmpi slt, %0, %4 : vector<1x256xi32>
    %c0_i32_2 = arith.constant 0 : i32
    %6 = vector.broadcast %c0_i32_2 : i32 to vector<1x256xi32>
    %7 = arith.cmpi sgt, %1, %6 : vector<1x256xi32>
    %c15_i32_3 = arith.constant 15 : i32
    %8 = vector.broadcast %c15_i32_3 : i32 to vector<1x256xi32>
    %9 = arith.cmpi slt, %1, %8 : vector<1x256xi32>
    %c0_4 = arith.constant 0 : index
    %c0_5 = arith.constant 0 : index
    %10 = vector.load %arg3[%c0_4, %c0_5] : memref<8x8xbf16, #tpu.memory_space<vmem>>, vector<8x8xbf16>
    %c0_6 = arith.constant 0 : index
    %c0_7 = arith.constant 0 : index
    %11 = vector.load %arg5[%c0_6, %c0_7] : memref<16x8xbf16, #tpu.memory_space<vmem>>, vector<16x8xbf16>
    %c0_8 = arith.constant 0 : index
    %c0_9 = arith.constant 0 : index
    %12 = vector.load %arg4[%c0_8, %c0_9] : memref<8x1xf32, #tpu.memory_space<vmem>>, vector<8x1xf32>
    %c0_10 = arith.constant 0 : index
    %c0_11 = arith.constant 0 : index
    %13 = vector.load %arg6[%c0_10, %c0_11] : memref<8x1xf32, #tpu.memory_space<vmem>>, vector<8x1xf32>
    %c0_12 = arith.constant 0 : index
    %c0_13 = arith.constant 0 : index
    %14 = vector.load %arg8[%c0_12, %c0_13] : memref<8x1xf32, #tpu.memory_space<vmem>>, vector<8x1xf32>
    %c0_i32_14 = arith.constant 0 : i32
    %15 = arith.index_cast %c0_i32_14 : i32 to index
    %c0_15 = arith.constant 0 : index
    %c0_16 = arith.constant 0 : index
    %16 = vector.load %arg2[%15, %c0_15, %c0_16] : memref<1x8x256xf32, #tpu.memory_space<vmem>>, vector<1x8x256xf32>
    %17 = vector.shape_cast %16 : vector<1x8x256xf32> to vector<8x256xf32>
    %18 = arith.truncf %17 : vector<8x256xf32> to vector<8x256xbf16>
    %cst = arith.constant dense<0.000000e+00> : vector<8x256xf32>
    %19 = tpu.matmul %10, %18, %cst {dimension_numbers = #tpu.dot_dimension_numbers<[1], [0], [0], [1], [0, 0, 1, 1], [], []>} : vector<8x8xbf16>, vector<8x256xbf16>, vector<8x256xf32> -> vector<8x256xf32>
    %20 = vector.broadcast %12 : vector<8x1xf32> to vector<8x256xf32>
    %21 = arith.addf %19, %20 : vector<8x256xf32>
    %cst_17 = arith.constant 0.000000e+00 : f32
    %22 = vector.broadcast %cst_17 : f32 to vector<8x256xf32>
    %23 = arith.maximumf %21, %22 : vector<8x256xf32>
    %24 = arith.truncf %23 : vector<8x256xf32> to vector<8x256xbf16>
    %cst_18 = arith.constant dense<0.000000e+00> : vector<16x256xf32>
    %25 = tpu.matmul %11, %24, %cst_18 {dimension_numbers = #tpu.dot_dimension_numbers<[1], [0], [0], [1], [0, 0, 1, 1], [], []>} : vector<16x8xbf16>, vector<8x256xbf16>, vector<16x256xf32> -> vector<16x256xf32>
    %c17_i32 = arith.constant 17 : i32
    %26 = tpu.dynamic_rotate %23 by %c17_i32 dim 1 : vector<8x256xf32>, i32 -> vector<8x256xf32>
    %27 = arith.andi %3, %7 : vector<1x256xi1>
    %cst_19 = arith.constant 0.000000e+00 : f32
    %28 = vector.shape_cast %27 : vector<1x256xi1> to vector<1x256xi1>
    %29 = vector.broadcast %28 : vector<1x256xi1> to vector<8x256xi1>
    %30 = vector.broadcast %cst_19 : f32 to vector<8x256xf32>
    %31 = arith.select %29, %26, %30 : vector<8x256xi1>, vector<8x256xf32>
    %32 = arith.truncf %31 : vector<8x256xf32> to vector<8x256xbf16>
    %c0_20 = arith.constant 0 : index
    %c0_21 = arith.constant 0 : index
    %c0_22 = arith.constant 0 : index
    %33 = vector.load %arg7[%c0_20, %c0_21, %c0_22] : memref<9x8x8xbf16, #tpu.memory_space<vmem>>, vector<1x8x8xbf16>
    %34 = vector.shape_cast %33 : vector<1x8x8xbf16> to vector<8x8xbf16>
    %cst_23 = arith.constant dense<0.000000e+00> : vector<8x256xf32>
    %35 = tpu.matmul %34, %32, %cst_23 {dimension_numbers = #tpu.dot_dimension_numbers<[1], [0], [0], [1], [0, 0, 1, 1], [], []>} : vector<8x8xbf16>, vector<8x256xbf16>, vector<8x256xf32> -> vector<8x256xf32>
    %c16_i32 = arith.constant 16 : i32
    %36 = tpu.dynamic_rotate %23 by %c16_i32 dim 1 : vector<8x256xf32>, i32 -> vector<8x256xf32>
    %cst_24 = arith.constant 0.000000e+00 : f32
    %37 = vector.shape_cast %3 : vector<1x256xi1> to vector<1x256xi1>
    %38 = vector.broadcast %37 : vector<1x256xi1> to vector<8x256xi1>
    %39 = vector.broadcast %cst_24 : f32 to vector<8x256xf32>
    %40 = arith.select %38, %36, %39 : vector<8x256xi1>, vector<8x256xf32>
    %41 = arith.truncf %40 : vector<8x256xf32> to vector<8x256xbf16>
    %c1_25 = arith.constant 1 : index
    %c0_26 = arith.constant 0 : index
    %c0_27 = arith.constant 0 : index
    %42 = vector.load %arg7[%c1_25, %c0_26, %c0_27] : memref<9x8x8xbf16, #tpu.memory_space<vmem>>, vector<1x8x8xbf16>
    %43 = vector.shape_cast %42 : vector<1x8x8xbf16> to vector<8x8xbf16>
    %cst_28 = arith.constant dense<0.000000e+00> : vector<8x256xf32>
    %44 = tpu.matmul %43, %41, %cst_28 {dimension_numbers = #tpu.dot_dimension_numbers<[1], [0], [0], [1], [0, 0, 1, 1], [], []>} : vector<8x8xbf16>, vector<8x256xbf16>, vector<8x256xf32> -> vector<8x256xf32>
    %45 = arith.addf %35, %44 : vector<8x256xf32>
    %c15_i32_29 = arith.constant 15 : i32
    %46 = tpu.dynamic_rotate %23 by %c15_i32_29 dim 1 : vector<8x256xf32>, i32 -> vector<8x256xf32>
    %47 = arith.andi %3, %9 : vector<1x256xi1>
    %cst_30 = arith.constant 0.000000e+00 : f32
    %48 = vector.shape_cast %47 : vector<1x256xi1> to vector<1x256xi1>
    %49 = vector.broadcast %48 : vector<1x256xi1> to vector<8x256xi1>
    %50 = vector.broadcast %cst_30 : f32 to vector<8x256xf32>
    %51 = arith.select %49, %46, %50 : vector<8x256xi1>, vector<8x256xf32>
    %52 = arith.truncf %51 : vector<8x256xf32> to vector<8x256xbf16>
    %c2 = arith.constant 2 : index
    %c0_31 = arith.constant 0 : index
    %c0_32 = arith.constant 0 : index
    %53 = vector.load %arg7[%c2, %c0_31, %c0_32] : memref<9x8x8xbf16, #tpu.memory_space<vmem>>, vector<1x8x8xbf16>
    %54 = vector.shape_cast %53 : vector<1x8x8xbf16> to vector<8x8xbf16>
    %cst_33 = arith.constant dense<0.000000e+00> : vector<8x256xf32>
    %55 = tpu.matmul %54, %52, %cst_33 {dimension_numbers = #tpu.dot_dimension_numbers<[1], [0], [0], [1], [0, 0, 1, 1], [], []>} : vector<8x8xbf16>, vector<8x256xbf16>, vector<8x256xf32> -> vector<8x256xf32>
    %56 = arith.addf %45, %55 : vector<8x256xf32>
    %c1_i32 = arith.constant 1 : i32
    %57 = tpu.dynamic_rotate %23 by %c1_i32 dim 1 : vector<8x256xf32>, i32 -> vector<8x256xf32>
    %cst_34 = arith.constant 0.000000e+00 : f32
    %58 = vector.shape_cast %7 : vector<1x256xi1> to vector<1x256xi1>
    %59 = vector.broadcast %58 : vector<1x256xi1> to vector<8x256xi1>
    %60 = vector.broadcast %cst_34 : f32 to vector<8x256xf32>
    %61 = arith.select %59, %57, %60 : vector<8x256xi1>, vector<8x256xf32>
    %62 = arith.truncf %61 : vector<8x256xf32> to vector<8x256xbf16>
    %c3 = arith.constant 3 : index
    %c0_35 = arith.constant 0 : index
    %c0_36 = arith.constant 0 : index
    %63 = vector.load %arg7[%c3, %c0_35, %c0_36] : memref<9x8x8xbf16, #tpu.memory_space<vmem>>, vector<1x8x8xbf16>
    %64 = vector.shape_cast %63 : vector<1x8x8xbf16> to vector<8x8xbf16>
    %cst_37 = arith.constant dense<0.000000e+00> : vector<8x256xf32>
    %65 = tpu.matmul %64, %62, %cst_37 {dimension_numbers = #tpu.dot_dimension_numbers<[1], [0], [0], [1], [0, 0, 1, 1], [], []>} : vector<8x8xbf16>, vector<8x256xbf16>, vector<8x256xf32> -> vector<8x256xf32>
    %66 = arith.addf %56, %65 : vector<8x256xf32>
    %c255_i32 = arith.constant 255 : i32
    %67 = tpu.dynamic_rotate %23 by %c255_i32 dim 1 : vector<8x256xf32>, i32 -> vector<8x256xf32>
    %cst_38 = arith.constant 0.000000e+00 : f32
    %68 = vector.shape_cast %9 : vector<1x256xi1> to vector<1x256xi1>
    %69 = vector.broadcast %68 : vector<1x256xi1> to vector<8x256xi1>
    %70 = vector.broadcast %cst_38 : f32 to vector<8x256xf32>
    %71 = arith.select %69, %67, %70 : vector<8x256xi1>, vector<8x256xf32>
    %72 = arith.truncf %71 : vector<8x256xf32> to vector<8x256xbf16>
    %c5 = arith.constant 5 : index
    %c0_39 = arith.constant 0 : index
    %c0_40 = arith.constant 0 : index
    %73 = vector.load %arg7[%c5, %c0_39, %c0_40] : memref<9x8x8xbf16, #tpu.memory_space<vmem>>, vector<1x8x8xbf16>
    %74 = vector.shape_cast %73 : vector<1x8x8xbf16> to vector<8x8xbf16>
    %cst_41 = arith.constant dense<0.000000e+00> : vector<8x256xf32>
    %75 = tpu.matmul %74, %72, %cst_41 {dimension_numbers = #tpu.dot_dimension_numbers<[1], [0], [0], [1], [0, 0, 1, 1], [], []>} : vector<8x8xbf16>, vector<8x256xbf16>, vector<8x256xf32> -> vector<8x256xf32>
    %76 = arith.addf %66, %75 : vector<8x256xf32>
    %c241_i32 = arith.constant 241 : i32
    %77 = tpu.dynamic_rotate %23 by %c241_i32 dim 1 : vector<8x256xf32>, i32 -> vector<8x256xf32>
    %78 = arith.andi %5, %7 : vector<1x256xi1>
    %cst_42 = arith.constant 0.000000e+00 : f32
    %79 = vector.shape_cast %78 : vector<1x256xi1> to vector<1x256xi1>
    %80 = vector.broadcast %79 : vector<1x256xi1> to vector<8x256xi1>
    %81 = vector.broadcast %cst_42 : f32 to vector<8x256xf32>
    %82 = arith.select %80, %77, %81 : vector<8x256xi1>, vector<8x256xf32>
    %83 = arith.truncf %82 : vector<8x256xf32> to vector<8x256xbf16>
    %c6 = arith.constant 6 : index
    %c0_43 = arith.constant 0 : index
    %c0_44 = arith.constant 0 : index
    %84 = vector.load %arg7[%c6, %c0_43, %c0_44] : memref<9x8x8xbf16, #tpu.memory_space<vmem>>, vector<1x8x8xbf16>
    %85 = vector.shape_cast %84 : vector<1x8x8xbf16> to vector<8x8xbf16>
    %cst_45 = arith.constant dense<0.000000e+00> : vector<8x256xf32>
    %86 = tpu.matmul %85, %83, %cst_45 {dimension_numbers = #tpu.dot_dimension_numbers<[1], [0], [0], [1], [0, 0, 1, 1], [], []>} : vector<8x8xbf16>, vector<8x256xbf16>, vector<8x256xf32> -> vector<8x256xf32>
    %87 = arith.addf %76, %86 : vector<8x256xf32>
    %c240_i32 = arith.constant 240 : i32
    %88 = tpu.dynamic_rotate %23 by %c240_i32 dim 1 : vector<8x256xf32>, i32 -> vector<8x256xf32>
    %cst_46 = arith.constant 0.000000e+00 : f32
    %89 = vector.shape_cast %5 : vector<1x256xi1> to vector<1x256xi1>
    %90 = vector.broadcast %89 : vector<1x256xi1> to vector<8x256xi1>
    %91 = vector.broadcast %cst_46 : f32 to vector<8x256xf32>
    %92 = arith.select %90, %88, %91 : vector<8x256xi1>, vector<8x256xf32>
    %93 = arith.truncf %92 : vector<8x256xf32> to vector<8x256xbf16>
    %c7 = arith.constant 7 : index
    %c0_47 = arith.constant 0 : index
    %c0_48 = arith.constant 0 : index
    %94 = vector.load %arg7[%c7, %c0_47, %c0_48] : memref<9x8x8xbf16, #tpu.memory_space<vmem>>, vector<1x8x8xbf16>
    %95 = vector.shape_cast %94 : vector<1x8x8xbf16> to vector<8x8xbf16>
    %cst_49 = arith.constant dense<0.000000e+00> : vector<8x256xf32>
    %96 = tpu.matmul %95, %93, %cst_49 {dimension_numbers = #tpu.dot_dimension_numbers<[1], [0], [0], [1], [0, 0, 1, 1], [], []>} : vector<8x8xbf16>, vector<8x256xbf16>, vector<8x256xf32> -> vector<8x256xf32>
    %97 = arith.addf %87, %96 : vector<8x256xf32>
    %c239_i32 = arith.constant 239 : i32
    %98 = tpu.dynamic_rotate %23 by %c239_i32 dim 1 : vector<8x256xf32>, i32 -> vector<8x256xf32>
    %99 = arith.andi %5, %9 : vector<1x256xi1>
    %cst_50 = arith.constant 0.000000e+00 : f32
    %100 = vector.shape_cast %99 : vector<1x256xi1> to vector<1x256xi1>
    %101 = vector.broadcast %100 : vector<1x256xi1> to vector<8x256xi1>
    %102 = vector.broadcast %cst_50 : f32 to vector<8x256xf32>
    %103 = arith.select %101, %98, %102 : vector<8x256xi1>, vector<8x256xf32>
    %104 = arith.truncf %103 : vector<8x256xf32> to vector<8x256xbf16>
    %c8 = arith.constant 8 : index
    %c0_51 = arith.constant 0 : index
    %c0_52 = arith.constant 0 : index
    %105 = vector.load %arg7[%c8, %c0_51, %c0_52] : memref<9x8x8xbf16, #tpu.memory_space<vmem>>, vector<1x8x8xbf16>
    %106 = vector.shape_cast %105 : vector<1x8x8xbf16> to vector<8x8xbf16>
    %cst_53 = arith.constant dense<0.000000e+00> : vector<8x256xf32>
    %107 = tpu.matmul %106, %104, %cst_53 {dimension_numbers = #tpu.dot_dimension_numbers<[1], [0], [0], [1], [0, 0, 1, 1], [], []>} : vector<8x8xbf16>, vector<8x256xbf16>, vector<8x256xf32> -> vector<8x256xf32>
    %108 = arith.addf %97, %107 : vector<8x256xf32>
    %109 = vector.extract_strided_slice %25 {offsets = [0, 0], sizes = [8, 256], strides = [1, 1]} : vector<16x256xf32> to vector<8x256xf32>
    %110 = vector.broadcast %13 : vector<8x1xf32> to vector<8x256xf32>
    %111 = arith.addf %109, %110 : vector<8x256xf32>
    %cst_54 = arith.constant 0.000000e+00 : f32
    %112 = vector.broadcast %cst_54 : f32 to vector<8x256xf32>
    %113 = arith.maximumf %111, %112 : vector<8x256xf32>
    %114 = vector.extract_strided_slice %25 {offsets = [8, 0], sizes = [8, 256], strides = [1, 1]} : vector<16x256xf32> to vector<8x256xf32>
    %115 = arith.addf %114, %108 : vector<8x256xf32>
    %116 = vector.broadcast %14 : vector<8x1xf32> to vector<8x256xf32>
    %117 = arith.addf %115, %116 : vector<8x256xf32>
    %cst_55 = arith.constant 0.000000e+00 : f32
    %118 = vector.broadcast %cst_55 : f32 to vector<8x256xf32>
    %119 = arith.maximumf %117, %118 : vector<8x256xf32>
    %120 = arith.index_cast %c0_i32_14 : i32 to index
    %c0_56 = arith.constant 0 : index
    %c0_57 = arith.constant 0 : index
    %121 = vector.load %arg9[%120, %c0_56, %c0_57] : memref<1x16x256xf32, #tpu.memory_space<vmem>>, vector<1x8x256xf32>
    %122 = vector.shape_cast %121 : vector<1x8x256xf32> to vector<8x256xf32>
    %123 = vector.shape_cast %113 : vector<8x256xf32> to vector<1x8x256xf32>
    tpu.vector_store %arg9[%120, %c0_56, %c0_57], %123 {strides = array<i32>} : memref<1x16x256xf32, #tpu.memory_space<vmem>>, vector<1x8x256xf32>,
    %124 = arith.index_cast %c0_i32_14 : i32 to index
    %c8_58 = arith.constant 8 : index
    %c0_59 = arith.constant 0 : index
    %125 = vector.load %arg9[%124, %c8_58, %c0_59] : memref<1x16x256xf32, #tpu.memory_space<vmem>>, vector<1x8x256xf32>
    %126 = vector.shape_cast %125 : vector<1x8x256xf32> to vector<8x256xf32>
    %127 = vector.shape_cast %119 : vector<8x256xf32> to vector<1x8x256xf32>
    tpu.vector_store %arg9[%124, %c8_58, %c0_59], %127 {strides = array<i32>} : memref<1x16x256xf32, #tpu.memory_space<vmem>>, vector<1x8x256xf32>,
    %c1_i32_60 = arith.constant 1 : i32
    return
  }
  func.func @transform_0(%arg0: i32) -> (i32, i32) {
    %c0_i32 = arith.constant 0 : i32
    %c0_i32_0 = arith.constant 0 : i32
    %c0_i32_1 = arith.constant 0 : i32
    return %c0_i32, %c0_i32_0 : i32, i32
  }
  func.func @transform_1(%arg0: i32) -> (i32, i32, i32) {
    %c0_i32 = arith.constant 0 : i32
    %c0_i32_0 = arith.constant 0 : i32
    %c0_i32_1 = arith.constant 0 : i32
    return %arg0, %c0_i32, %c0_i32_0 : i32, i32, i32
  }
  func.func @transform_2(%arg0: i32) -> (i32, i32) {
    %c0_i32 = arith.constant 0 : i32
    %c0_i32_0 = arith.constant 0 : i32
    %c0_i32_1 = arith.constant 0 : i32
    return %c0_i32, %c0_i32_0 : i32, i32
  }
  func.func @transform_3(%arg0: i32) -> (i32, i32) {
    %c0_i32 = arith.constant 0 : i32
    %c0_i32_0 = arith.constant 0 : i32
    %c0_i32_1 = arith.constant 0 : i32
    return %c0_i32, %c0_i32_0 : i32, i32
  }
  func.func @transform_4(%arg0: i32) -> (i32, i32) {
    %c0_i32 = arith.constant 0 : i32
    %c0_i32_0 = arith.constant 0 : i32
    %c0_i32_1 = arith.constant 0 : i32
    return %c0_i32, %c0_i32_0 : i32, i32
  }
  func.func @transform_5(%arg0: i32) -> (i32, i32) {
    %c0_i32 = arith.constant 0 : i32
    %c0_i32_0 = arith.constant 0 : i32
    %c0_i32_1 = arith.constant 0 : i32
    return %c0_i32, %c0_i32_0 : i32, i32
  }
  func.func @transform_6(%arg0: i32) -> (i32, i32, i32) {
    %c0_i32 = arith.constant 0 : i32
    %c0_i32_0 = arith.constant 0 : i32
    %c0_i32_1 = arith.constant 0 : i32
    %c0_i32_2 = arith.constant 0 : i32
    return %c0_i32, %c0_i32_0, %c0_i32_1 : i32, i32, i32
  }
  func.func @transform_7(%arg0: i32) -> (i32, i32) {
    %c0_i32 = arith.constant 0 : i32
    %c0_i32_0 = arith.constant 0 : i32
    %c0_i32_1 = arith.constant 0 : i32
    return %c0_i32, %c0_i32_0 : i32, i32
  }
  func.func @transform_8(%arg0: i32) -> (i32, i32, i32) {
    %c0_i32 = arith.constant 0 : i32
    %c0_i32_0 = arith.constant 0 : i32
    %c0_i32_1 = arith.constant 0 : i32
    return %arg0, %c0_i32, %c0_i32_0 : i32, i32, i32
  }
}

</mosaic_0001>

<bundles_post_ra>
// kernel: tpu_custom_call.1
= control target key start
LH: loop header
LB: loop body
LE: loop exit
PB: predicated region body
PF: predicated region fallthrough
CT: control target
= control target key end

     0   :  { %13 = vsyncpa [#allocation3], 0  ;;  %s1807_s0 = inlined_call_operand.vmem [shape: s32[2,256], index: 0, kind: input, shape index: {}]   ;;  %s1808_s1 = inlined_call_operand.vmem [shape: f32[2,8,256], index: 1, kind: input, shape index: {}]   ;;  %s1809_s2 = inlined_call_operand.vmem [shape: bf16[8,8], index: 2, kind: input, shape index: {}]   ;;  %s1810_s3 = inlined_call_operand.vmem [shape: f32[8,1], index: 3, kind: input, shape index: {}]   ;;  %s1811_s4 = inlined_call_operand.vmem [shape: bf16[16,8], index: 4, kind: input, shape index: {}]   ;;  %s1812_s5 = inlined_call_operand.vmem [shape: f32[8,1], index: 5, kind: input, shape index: {}]   ;;  %s1813_s6 = inlined_call_operand.vmem [shape: bf16[9,8,8], index: 6, kind: input, shape index: {}]   ;;  %s1814_s7 = inlined_call_operand.vmem [shape: f32[8,1], index: 7, kind: input, shape index: {}]   ;;  %s1815_s8 = inlined_call_operand.hbm [shape: f32[2,16,256], index: 8, kind: output, shape index: {}]  }
   0x1   :  { %15 = vsyncpa [#allocation3 + $0x1], 0  ;;  %s1430_s27 = smov 0   ;;  %s1432_s28 = smov 0  }
   0x2   :  { %s1434_s29 = smov 0   ;;  %s1436_s30 = smov 0  }
   0x3 LB: > { %s1451_s9 = sadd.s32 4294967295, %s1372_s30   ;;  %s1149_s10 = sadd.s32 4294967294, %s1372_s30   ;;  %s1372_s30 = sphi %s1436_s30, %s1845_s30   ;;  %s1368_s29 = sphi %s1434_s29, %s1844_s29   ;;  %s1364_s28 = sphi %s1432_s28, %s1843_s28   ;;  %s1360_s27 = sphi %s1430_s27, %s1842_s27  }
   0x4   : > { %s1455_s11 = sadd.s32 1, %s1372_s30   ;;  %s201_s12 = sadd.s32 1, %s1368_s29 }
   0x5   : > { %s198_s13 = ssub.s32 %s1372_s30, %s1455_s11  ;;  %p211_p0 = scmp.ne.s32.totalorder %s1368_s29, %s1364_s28 }
   0x6   : > { %p199_p1 = scmp.eq.s32.totalorder %s198_s13, 0  ;;  %p212_p2 = scmp.eq.s32.totalorder %s1451_s9, 1 }
   0x7   : > { %p217_p3 = scmp.ne.s32.totalorder %s1364_s28, %s1360_s27  ;;  %p218_p4 = scmp.eq.s32.totalorder %s1149_s10, 1 }
   0x8   : > { %s1466_s14 = scalar_select %p199_p1, %s1368_s29, %s201_s12  }
   0x9   : > { %p1468_p5 = por %p212_p2, %p211_p0  ;;  %p1472_p6 = por %p218_p4, %p217_p3 }
   0xa   : > { %p1152_p7 = scmp.ge.s32.totalorder %s1372_s30, 1  ;;  %p265_p8 = scmp.lt.s32.totalorder %s1372_s30, 3 }
   0xc   : > { %p266_p9 = pnand %p1152_p7, %p265_p8 }
   0xd   : > { %p299_p10 = scmp.lt.s32.totalorder (!%p266_p9), %s1451_s9, 1  ;;  %v1374_v0 = vmov (!%p266_p9), 0   ;;  %v315_v1 = vld [vmem:[%s1810_s3] sm:$0xff] (!%p266_p9)  ;;  %vm331_vm0 = vcmask (!%p266_p9), 1043456   ;;  %vm327_vm1 = vcmask (!%p266_p9), 64512   ;;  %s1375_s26 = smov (!%p266_p9), 127   ;;  %v444_v24 = vlaneseq (!%p266_p9) }
   0xe   : > { %269 = sbr.rel (%p266_p9) target bundleno = 661 (0x295), region = 52  ;;  %370 = vmatprep.mubr.bf16.mxu1 (!%p266_p9), %v1374_v0  ;;  %1267 = vset.pattern.permute.xlu0 (!%p266_p9), %v1374_v0  ;;  %v312_v7 = vld [vmem:[%s1809_s2] sm:$0xf] (!%p266_p9)  ;;  %s1376_s13 = smov (!%p266_p9), 1  }
   0xf   : > { %324 = vperm.xlu0 (!%p266_p9), %1267, %v315_v1   ;;  %732 = vmatprep.mubr.bf16.mxu0 (!%p266_p9), %v1374_v0  ;;  %v1309_v21 = vld [vmem:[%s1811_s4] sm:$0xff] (!%p266_p9)   ;;  %s1377_s17 = smov (!%p266_p9), 16   ;;  %s1378_s18 = smov (!%p266_p9), 113   ;;  %v452_v26 = vshrl.u32 (!%p266_p9), %v444_v24, 7  ;;  %v1535_v32 = vand.u32 (!%p266_p9), 127, %v444_v24 }
  0x10   : > { %1308 = vset.pattern.permute.xlu1 (!%p266_p9), %v1374_v0  ;;  %s1381_s21 = smov (!%p266_p9), 15   ;;  %s1382_s22 = smov (!%p266_p9), 111   ;;  %v317_v22 = vld [vmem:[%s1814_s7] sm:$0xff] (!%p266_p9) }
  0x11   : > { %v316_v23 = vld [vmem:[%s1812_s5] sm:$0xff] (!%p266_p9)  ;;  %v1523_v28 = vsub.s32 (!%p266_p9), 1, %v452_v26  ;;  %v1531_v31 = vsub.s32 (!%p266_p9), 0, %v452_v26  ;;  %vm747_vm8 = vcmp.lt.s32.totalorder (!%p266_p9), %v1535_v32, 127  ;;  %vm470_vm11 = vcmp.lt.s32.totalorder (!%p266_p9), %v1535_v32, 16  ;;  %s1191_s10 = sshll.u32 (!%p266_p9), %s1451_s9, 9 }
  0x12   : > { %v1514_v25 = vld [vmem:[%s1807_s0 + $0x1] ss:$2 sm:$0x3] (!%p266_p9)  ;;  %v1519_v27 = vld [vmem:[%s1807_s0] ss:$2 sm:$0x3] (!%p266_p9) }
  0x13   : > { %vm311_vm2 = vcmp.lt.s32.totalorder (!%p266_p9), %v1514_v25, 15  ;;  %vm310_vm3 = vcmp.gt.s32.totalorder (!%p266_p9), %v1514_v25, 0  ;;  %vm1816_vm4 = vcmp.lt.s32.totalorder (!%p266_p9), %v1519_v27, 15  ;;  %vm308_vm5 = vcmp.gt.s32.totalorder (!%p266_p9), %v1519_v27, 0 }
  0x14   : > { %v750_v29 = vsel (!%p266_p9), %vm311_vm2, 1, %v1374_v0  ;;  %v674_v30 = vsel (!%p266_p9), %vm310_vm3, 1, %v1374_v0  ;;  %vm826_vm6 = vmand (!%p266_p9), %vm1816_vm4, %vm310_vm3  ;;  %v473_v34 = vsel (!%p266_p9), %vm308_vm5, 1, %v1374_v0  ;;  %vm671_vm12 = vcmp.lt.s32.totalorder (!%p266_p9), %v1535_v32, 1 }
  0x15   : > { %s300_s19 = scalar_select %p299_p10, %s1451_s9, 1  ;;  %v758_v33 = vrot.slane %v750_v29, %v1523_v28  ;;  %vm449_vm7 = vmand %vm308_vm5, %vm310_vm3  ;;  %v682_v35 = vrot.slane %v674_v30, %v1523_v28  ;;  %v1545_v36 = vsel %vm826_vm6, 1, %v1374_v0  ;;  %v678_v37 = vrot.slane %v674_v30, %v1531_v31 }
  0x16   : > { %v754_v38 = vrot.slane %v750_v29, %v1531_v31  ;;  %v481_v39 = vrot.slane %v473_v34, %v1523_v28  ;;  %v1551_v40 = vsel %vm449_vm7, 1, %v1374_v0  ;;  %vm597_vm10 = vmand %vm308_vm5, %vm311_vm2  ;;  %v477_v42 = vrot.slane %v473_v34, %v1531_v31  ;;  %s1383_s9 = smov [#allocation2]  }
  0x17   : > { %s1190_s20 = sshll.u32 %s300_s19, 4  ;;  %s1379_s19 = smov 17   ;;  %vm1554_vm9 = vcmp.eq.s32.totalorder %v758_v33, 1  ;;  %vm1565_vm13 = vcmp.eq.s32.totalorder %v682_v35, 1  ;;  %v835_v44 = vrot.slane %v1545_v36, %v1523_v28  ;;  %v458_v45 = vrot.slane %v1551_v40, %v1523_v28  ;;  %v1170_v33 = vld [vmem:[%s1813_s6 + $0xc] sm:$0xf] }
  0x18   : > { %s303_s23 = scalar_lea.vmem %s1808_s1, %s1190_s20  ;;  %s1380_s20 = smov 112   ;;  %v1576_v46 = vsel %vm1816_vm4, 1, %v1374_v0  ;;  %vm1578_vm14 = vcmp.eq.s32.totalorder %v678_v37, 1  ;;  %vm1582_vm15 = vcmp.eq.s32.totalorder %v754_v38, 1  ;;  %vm1586_vm3 = vcmp.eq.s32.totalorder %v481_v39, 1 }
  0x19   : > { %v319_v2 = vld [vmem:[%s303_s23 + $0x8] sm:$0xff]  ;;  %v318_v3 = vld [vmem:[%s303_s23] sm:$0xff]  ;;  %vm823_vm5 = vcmp.lt.s32.totalorder %v1535_v32, 113  ;;  %vm446_vm6 = vcmp.lt.s32.totalorder %v1535_v32, 17  ;;  %v1593_v51 = vsel %vm597_vm10, 1, %v1374_v0  ;;  %vm1595_vm7 = vcmp.eq.s32.totalorder %v477_v42, 1 }
  0x1a   : > { %v321_v4 = vpack.c.bf16 %v319_v2, %v319_v2  ;;  %v320_v5 = vpack.c.bf16 %v318_v3, %v318_v3  ;;  %v831_v56 = vrot.slane %v1545_v36, %v1531_v31  ;;  %v911_v59 = vrot.slane %v1576_v46, %v1523_v28  ;;  %s296_s23 = sand.u32 1, %s1364_s28  }
  0x1b   : > { %vm1603_vm4 = vcmp.eq.s32.totalorder %v835_v44, 1  ;;  %vm1611_vm10 = vcmp.eq.s32.totalorder %v458_v45, 1  ;;  %v606_v1 = vrot.slane %v1593_v51, %v1523_v28  ;;  %v602_v48 = vrot.slane %v1593_v51, %v1531_v31  ;;  %s1153_s24 = sshll.u32 %s296_s23, 5 }
  0x1c   : > { %1157 = vmatprep.subr.msk.bf16.mxu1 %vm331_vm0, %v321_v4  ;;  %v333_v6 = vsel %vm331_vm0, %v320_v5, 0  ;;  %s298_s25 = scalar_lea.vmem [#allocation2], %s1153_s24 }
  0x1d   : > { %339 = vmatpush1.bf16.msra.mxu1 %v333_v6 }
  0x20   : > { %1158 = vmatmul.mubr.msk.bf16.vlgmr.msra.gmra.mrb[0].mxu1 %vm327_vm1, %v312_v7 }
  0x21   : > { %429 = vmatprep.mubr.bf16.mxu1 %v1374_v0 }
  0x8e   : > { %v325_v8 = vpop.permute.xlu0 %324 }
  0xf3   : > { %v372_v9 = vpop.f32.mrb[0].mxu1 }
  0xf4   : > { %v373_v10 = vadd.f32 %v372_v9, %v325_v8  ;;  %v374_v11 = vpop.f32.mrb[1].mxu1 }
  0xf5   : > { %v375_v12 = vadd.f32 %v374_v11, %v325_v8  ;;  %v376_v13 = vpop.f32.mrb[2].mxu1 }
  0xf6   : > { %v379_v14 = vmax.f32 %v373_v10, 0.0  ;;  %v377_v15 = vpop.f32.mrb[3].mxu1 }
  0xf7   : > { %v380_v16 = vmax.f32 %v375_v12, 0.0 }
  0xf8   : > { %v381_v17 = vpack.c.bf16 %v379_v14, %v379_v14 }
  0xf9   : > { %v382_v18 = vpack.c.bf16 %v380_v16, %v380_v16  ;;  %v1273_v19 = vpack.i.bf16 %v380_v16, %v379_v14 }
  0xfa   : > { %v392_v20 = vsel %vm331_vm0, %v381_v17, 0 }
  0xfb   : > { %1160 = vmatprep.subr.msk.bf16.mxu1 %vm331_vm0, %v382_v18  ;;  %1274 = vrot.lane.b32.xlu1 %v1273_v19, %s1375_s26  ;;  %s1087_s26 = sshll.u32 %s298_s25, 4  ;;  %s1756_s26 = int_to_ptr.vmem [resolvable:$true] %s1087_s26 }
  0xfc   : > { %1269 = vrot.lane.b32.xlu0 %v1273_v19, %s1376_s13  ;;  %398 = vmatpush1.bf16.msra.mxu1 %v392_v20 }
  0xff   : > { %1279 = vrot.lane.b32.xlu1 %v1273_v19, %s1377_s17  ;;  %1161 = vmatmul.mubr.msk.bf16.vlgmr.msra.gmra.mrb[4].mxu1 %vm327_vm1, %v1309_v21 }
 0x100   : > { %1284 = vrot.lane.b32.xlu0 %v1273_v19, %s1378_s18  ;;  %531 = vmatprep.mubr.bf16.mxu1 %v1374_v0  ;;  %s1761_s18 = scalar_lea.hbm %s1815_s8, %s1191_s10 }
 0x103   : > { %1289 = vrot.lane.b32.xlu1 %v1273_v19, %s1379_s19  ;;  %s1765_s19 = scalar_lea.sflag [#allocation3], %s296_s23 }
 0x104   : > { %1294 = vrot.lane.b32.xlu0 %v1273_v19, %s1380_s20  ;;  %s1310_s20 = scalar_lea.vmem %s1756_s26, 512 }
 0x105   : > { %p1311_p11 = scmp.ne.s32.totalorder %s1756_s26, %s1310_s20 }
 0x107   : > { %1299 = vrot.lane.b32.xlu1 %v1273_v19, %s1381_s21  ;;  %p1312_p12 = pnand %p1311_p11, %p1468_p5  ;;  %s1314_s21 = sshll.u32 %s1383_s9, 4  ;;  %s1315_s21 = int_to_ptr.vmem [resolvable:$false] %s1314_s21 }
 0x108   : > { %1304 = vrot.lane.b32.xlu0 %v1273_v19, %s1382_s22  ;;  %v454_v19 = vrot.slane %v1551_v40, %v1531_v31  ;;  %s1316_s22 = scalar_lea.vmem %s1315_s21, 1024  ;;  %p1317_p0 = scmp.lt.s32.totalorder %s1756_s26, %s1315_s21 }
 0x109   : > { %p1313_p13 = pneg %p1312_p12  ;;  %p1318_p1 = scmp.lt.s32.totalorder %s1316_s22, %s1310_s20 }
 0x10b   : > { %1051 = vperm.xlu1 %1308, %v316_v23   ;;  %p1319_p2 = por %p1318_p1, %p1317_p0 }
 0x10c   : > { %1062 = vperm.xlu0 %1267, %v317_v22  }
 0x10d   : > { %p1320_p3 = pnand %p1319_p2, %p1313_p13 }
 0x16d   : > { %v1275_v49 = vpop.permute.xlu1 %1274 }
 0x16e   : > { %v1277_v52 = vunpack.i.h.bf16 %v1275_v49  ;;  %v1276_v53 = vunpack.i.l.bf16 %v1275_v49  ;;  %v1270_v54 = vpop.permute.xlu0 %1269 }
 0x16f   : > { %v1272_v57 = vunpack.i.h.bf16 %v1270_v54  ;;  %v1271_v58 = vunpack.i.l.bf16 %v1270_v54  ;;  %v1162_v54 = vld [vmem:[%s1813_s6 + $0x4] sm:$0xf] }
 0x170   : > { %v748_v61 = vsel %vm747_vm8, %v1276_v53, %v1277_v52  ;;  %v749_v62 = vsel %vm747_vm8, %v1277_v52, %v1276_v53  ;;  %vm594_vm8 = vcmp.lt.s32.totalorder %v1535_v32, 15 }
 0x171   : > { %v762_v2 = vsel %vm1554_vm9, %v749_v62, 0.0  ;;  %v1280_v3 = vpop.permute.xlu1 %1279  ;;  %v672_v4 = vsel %vm671_vm12, %v1271_v58, %v1272_v57  ;;  %v673_v5 = vsel %vm671_vm12, %v1272_v57, %v1271_v58  ;;  %v761_v6 = vsel %vm1582_vm15, %v748_v61, 0.0 }
 0x172   : > { %v1282_v7 = vunpack.i.h.bf16 %v1280_v3  ;;  %v1281_v8 = vunpack.i.l.bf16 %v1280_v3  ;;  %v1285_v9 = vpop.permute.xlu0 %1284  ;;  %v686_v10 = vsel %vm1565_vm13, %v672_v4, 0.0  ;;  %v685_v11 = vsel %vm1578_vm14, %v673_v5, 0.0 }
 0x173   : > { %v1287_v12 = vunpack.i.h.bf16 %v1285_v9  ;;  %v1286_v13 = vunpack.i.l.bf16 %v1285_v9  ;;  %v688_v14 = vpack.c.bf16 %v686_v10, %v686_v10  ;;  %v687_v15 = vpack.c.bf16 %v685_v11, %v685_v11 }
 0x174   : > { %v471_v16 = vsel %vm470_vm11, %v1281_v8, %v1282_v7  ;;  %v472_v17 = vsel %vm470_vm11, %v1282_v7, %v1281_v8  ;;  %v764_v18 = vpack.c.bf16 %v762_v2, %v762_v2  ;;  %v763_v24 = vpack.c.bf16 %v761_v6, %v761_v6 }
 0x175   : > { %v485_v20 = vsel %vm1586_vm3, %v471_v16, 0.0  ;;  %v825_v21 = vsel %vm823_vm5, %v1287_v12, %v1286_v13  ;;  %1171 = vmatprep.subr.msk.bf16.mxu0 %vm331_vm0, %v688_v14  ;;  %v1290_v22 = vpop.permute.xlu1 %1289  ;;  %v695_v23 = vsel %vm331_vm0, %v687_v15, 0  ;;  %v484_v34 = vsel %vm1595_vm7, %v472_v17, 0.0 }
 0x176   : > { %v1292_v26 = vunpack.i.h.bf16 %v1290_v22  ;;  %v1291_v29 = vunpack.i.l.bf16 %v1290_v22  ;;  %701 = vmatpush1.bf16.msra.mxu0 %v695_v23  ;;  %v487_v30 = vpack.c.bf16 %v485_v20, %v485_v20  ;;  %vm1648_vm9 = vcmp.eq.s32.totalorder %v606_v1, 1  ;;  %v1295_v40 = vpop.permute.xlu0 %1294  ;;  %v1167_v23 = vld [vmem:[%s1813_s6 + $0x8] sm:$0xf] }
 0x177   : > { %1174 = vmatprep.subr.msk.bf16.mxu0 %vm331_vm0, %v764_v18  ;;  %v486_v36 = vpack.c.bf16 %v484_v34, %v484_v34  ;;  %vm1652_vm11 = vcmp.eq.s32.totalorder %v831_v56, 1  ;;  %v839_v41 = vsel %vm1603_vm4, %v825_v21, 0.0  ;;  %vm1663_vm12 = vcmp.eq.s32.totalorder %v454_v19, 1  ;;  %v1176_v19 = vld [vmem:[%s1813_s6 + $0x18] sm:$0xf] }
 0x178   : > { %v447_v38 = vsel %vm446_vm6, %v1291_v29, %v1292_v26  ;;  %v448_v39 = vsel %vm446_vm6, %v1292_v26, %v1291_v29  ;;  %1163 = vmatprep.subr.msk.bf16.mxu1 %vm331_vm0, %v487_v30  ;;  %v771_v47 = vsel %vm331_vm0, %v763_v24, 0  ;;  %v824_v49 = vsel %vm823_vm5, %v1286_v13, %v1287_v12  ;;  %v465_v12 = vld [vmem:[%s1813_s6] sm:$0xf]  ;;  %v1179_v29 = vld [vmem:[%s1813_s6 + $0x1c] sm:$0xf] }
 0x179   : > { %v462_v43 = vsel %vm1611_vm10, %v447_v38, 0.0  ;;  %1172 = vmatmul.mubr.msk.bf16.vlgmr.msra.gmra.mrb[0].mxu0 %vm327_vm1, %v1170_v33  ;;  %v1300_v44 = vpop.permute.xlu1 %1299  ;;  %v494_v45 = vsel %vm331_vm0, %v486_v36, 0  ;;  %v841_v53 = vpack.c.bf16 %v839_v41, %v839_v41  ;;  %v1297_v55 = vunpack.i.h.bf16 %v1295_v40 }
 0x17a   : > { %v1302_v50 = vunpack.i.h.bf16 %v1300_v44  ;;  %v1301_v52 = vunpack.i.l.bf16 %v1300_v44  ;;  %500 = vmatpush1.bf16.msra.mxu1 %v494_v45  ;;  %777 = vmatpush1.bf16.msra.mxu0 %v771_v47  ;;  %v1296_v56 = vunpack.i.l.bf16 %v1295_v40  ;;  %v464_v57 = vpack.c.bf16 %v462_v43, %v462_v43  ;;  %v1305_v9 = vpop.permute.xlu0 %1304 }
 0x17b   : > { %v461_v58 = vsel %vm1663_vm12, %v448_v39, 0.0  ;;  %808 = vmatprep.mubr.bf16.mxu0 %v1374_v0  ;;  %vm900_vm4 = vcmp.lt.s32.totalorder %v1535_v32, 112  ;;  %1177 = vmatprep.subr.msk.bf16.mxu0 %vm331_vm0, %v841_v53  ;;  %v838_v1 = vsel %vm1652_vm11, %v824_v49, 0.0  ;;  %vm913_vm13 = vcmp.eq.s32.totalorder %v911_v59, 1  ;;  %v1173_v59 = vld [vmem:[%s1813_s6 + $0x14] sm:$0xf] }
 0x17c   : > { %v595_v51 = vsel %vm594_vm8, %v1301_v52, %v1302_v50  ;;  %v463_v60 = vpack.c.bf16 %v461_v58, %v461_v58  ;;  %1165 = vmatprep.subr.msk.bf16.mxu1 %vm331_vm0, %v464_v57  ;;  %v902_v2 = vsel %vm900_vm4, %v1297_v55, %v1296_v56  ;;  %v596_v3 = vsel %vm594_vm8, %v1302_v50, %v1301_v52 }
 0x17d   : > { %v610_v61 = vsel %vm1648_vm9, %v595_v51, 0.0  ;;  %1164 = vmatmul.mubr.msk.bf16.vlgmr.msra.gmra.mrb[8].mxu1 %vm327_vm1, %v1162_v54  ;;  %vm607_vm14 = vcmp.eq.s32.totalorder %v602_v48, 1  ;;  %vm1841_vm15 = vcmp.lt.s32.totalorder %v1519_v27, 15  ;;  %v840_v4 = vpack.c.bf16 %v838_v1, %v838_v1 }
 0x17e   : > { %v544_v62 = vsel %vm331_vm0, %v463_v60, 0  ;;  %v612_v63 = vpack.c.bf16 %v610_v61, %v610_v61  ;;  %581 = vmatprep.mubr.bf16.mxu1 %v1374_v0  ;;  %vm979_vm3 = vmand %vm1841_vm15, %vm311_vm2  ;;  %v915_v5 = vsel %vm913_vm13, %v902_v2, 0.0  ;;  %v609_v6 = vsel %vm607_vm14, %v596_v3, 0.0 }
 0x17f   : > { %550 = vmatpush1.bf16.msra.mxu1 %v544_v62  ;;  %v980_v7 = vsel %vm979_vm3, 1, %v1374_v0  ;;  %v907_v8 = vrot.slane %v1576_v46, %v1531_v31  ;;  %v848_v25 = vsel %vm331_vm0, %v840_v4, 0  ;;  %v917_v27 = vpack.c.bf16 %v915_v5, %v915_v5 }
 0x180   : > { %1168 = vmatprep.subr.msk.bf16.mxu1 %vm331_vm0, %v612_v63  ;;  %v611_v10 = vpack.c.bf16 %v609_v6, %v609_v6  ;;  %v988_v11 = vrot.slane %v980_v7, %v1523_v28  ;;  %v901_v13 = vsel %vm900_vm4, %v1296_v56, %v1297_v55  ;;  %v1307_v46 = vunpack.i.h.bf16 %v1305_v9 }
 0x181   : > { %v1306_v14 = vunpack.i.l.bf16 %v1305_v9  ;;  %vm912_vm2 = vcmp.eq.s32.totalorder %v907_v8, 1  ;;  %vm976_vm5 = vcmp.lt.s32.totalorder %v1535_v32, 111  ;;  %v984_v20 = vrot.slane %v980_v7, %v1531_v31  ;;  %v1182_v32 = vld [vmem:[%s1813_s6 + $0x20] sm:$0xf] }
 0x182   : > { %v619_v28 = vsel %vm331_vm0, %v611_v10, 0  ;;  %v914_v15 = vsel %vm912_vm2, %v901_v13, 0.0  ;;  %vm990_vm6 = vcmp.eq.s32.totalorder %v988_v11, 1 }
 0x183   : > { %v978_v16 = vsel %vm976_vm5, %v1307_v46, %v1306_v14  ;;  %v916_v17 = vpack.c.bf16 %v914_v15, %v914_v15  ;;  %v977_v24 = vsel %vm976_vm5, %v1306_v14, %v1307_v46  ;;  %vm989_vm7 = vcmp.eq.s32.totalorder %v984_v20, 1 }
 0x184   : > { %v992_v18 = vsel %vm990_vm6, %v978_v16, 0.0  ;;  %v991_v31 = vsel %vm989_vm7, %v977_v24, 0.0 }
 0x185   : > { %1175 = vmatmul.mubr.msk.bf16.vlgmr.msra.gmra.mrb[0].mxu0 %vm327_vm1, %v1173_v59  ;;  %v924_v21 = vsel %vm331_vm0, %v916_v17, 0  ;;  %v994_v22 = vpack.c.bf16 %v992_v18, %v992_v18  ;;  %v993_v26 = vpack.c.bf16 %v991_v31, %v991_v31 }
 0x186   : > { %854 = vmatpush1.bf16.msra.mxu0 %v848_v25  ;;  %885 = vmatprep.mubr.bf16.mxu0 %v1374_v0 }
 0x187   : > { %1180 = vmatprep.subr.msk.bf16.mxu0 %vm331_vm0, %v917_v27  ;;  %v1001_v30 = vsel %vm331_vm0, %v993_v26, 0 }
 0x189   : > { %1166 = vmatmul.mubr.msk.bf16.vlgmr.msra.gmra.mrb[8].mxu1 %vm327_vm1, %v465_v12 }
 0x18a   : > { %625 = vmatpush1.bf16.msra.mxu1 %v619_v28  ;;  %656 = vmatprep.mubr.bf16.mxu1 %v1374_v0  ;;  %v1052_v33 = vpop.permute.xlu1 %1051 }
 0x18b   : > { %v1063_v54 = vpop.permute.xlu0 %1062 }
 0x191   : > { %1178 = vmatmul.mubr.msk.bf16.vlgmr.msra.gmra.mrb[0].mxu0 %vm327_vm1, %v1176_v19 }
 0x192   : > { %930 = vmatpush1.bf16.msra.mxu0 %v924_v21  ;;  %961 = vmatprep.mubr.bf16.mxu0 %v1374_v0 }
 0x193   : > { %1183 = vmatprep.subr.msk.bf16.mxu0 %vm331_vm0, %v994_v22 }
 0x195   : > { %1169 = vmatmul.mubr.msk.bf16.vlgmr.msra.gmra.mrb[8].mxu1 %vm327_vm1, %v1167_v23 }
 0x19d   : > { %1181 = vmatmul.mubr.msk.bf16.vlgmr.msra.gmra.mrb[0].mxu0 %vm327_vm1, %v1179_v29 }
 0x19e   : > { %1007 = vmatpush1.bf16.msra.mxu0 %v1001_v30  ;;  %1038 = vmatprep.mubr.bf16.mxu0 %v1374_v0 }
 0x1a9   : > { %1184 = vmatmul.mubr.msk.bf16.vlgmr.msra.gmra.mrb[0].mxu0 %vm327_vm1, %v1182_v32 }
 0x1d2   : > { %v431_v34 = vpop.f32.mrb[4].mxu1 }
 0x1d3   : > { %v433_v35 = vpop.f32.mrb[5].mxu1  ;;  %v1054_v36 = vadd.f32 %v1052_v33, %v431_v34 }
 0x1d4   : > { %v435_v37 = vpop.f32.mrb[6].mxu1  ;;  %v1055_v38 = vadd.f32 %v1052_v33, %v433_v35 }
 0x1d5   : > { %v1056_v39 = vmax.f32 %v1054_v36, 0.0  ;;  %v437_v40 = vpop.f32.mrb[7].mxu1 }
 0x1d6   : > { %v1057_v41 = vmax.f32 %v1055_v38, 0.0 }
 0x1d7   : > { %1069 = vst [vmem:[%s298_s25] sm:$0xff] %v1056_v39 }
 0x1d8   : > { %1070 = vst [vmem:[%s298_s25 + $0x8] sm:$0xff] %v1057_v41 }
 0x268   : > { %v658_v0 = vpop.f32.mrb[8].mxu1 }
 0x269   : > { %v660_v42 = vpop.f32.mrb[9].mxu1 }
 0x26a   : > { %v662_v43 = vpop.f32.mrb[10].mxu1 }
 0x26b   : > { %v663_v44 = vpop.f32.mrb[11].mxu1 }
 0x27c   : > { %v1040_v45 = vpop.f32.mrb[0].mxu0 }
 0x27d   : > { %v1192_v47 = vadd.f32 %v1040_v45, %v658_v0  ;;  %v1042_v48 = vpop.f32.mrb[1].mxu0 }
 0x27e   : > { %v1193_v49 = vadd.f32 %v1042_v48, %v660_v42  ;;  %v1044_v50 = vpop.f32.mrb[2].mxu0 }
 0x27f   : > { %v1058_v52 = vadd.f32 %v1192_v47, %v435_v37  ;;  %v1045_v53 = vpop.f32.mrb[3].mxu0 }
 0x280   : > { %v1059_v55 = vadd.f32 %v1193_v49, %v437_v40 }
 0x281   : > { %v1065_v56 = vadd.f32 %v1063_v54, %v1058_v52 }
 0x282   : > { %v1066_v57 = vadd.f32 %v1063_v54, %v1059_v55 }
 0x283   : > { %v1067_v58 = vmax.f32 %v1065_v56, 0.0 }
 0x284   : > { %v1068_v51 = vmax.f32 %v1066_v57, 0.0 }
 0x285   : > { %1071 = vst [vmem:[%s298_s25 + $0x10] sm:$0xff] %v1067_v58 }
 0x286   : > { %1072 = vst [vmem:[%s298_s25 + $0x18] sm:$0xff] %v1068_v51 }
 0x287   : > { %1323 = shalt.err (!%p1320_p3)
}
 0x288   : > { %s1324_s23 = scalar_lea.hbm %s1761_s18, 512  ;;  %s1328_s10 = scalar_lea.hbm %s1815_s8, 1024 }
 0x289   : > { %p1325_p4 = scmp.ne.s32.totalorder %s1761_s18, %s1324_s23  ;;  %p1329_p9 = scmp.lt.u32.totalorder %s1761_s18, %s1815_s8 }
 0x28a   : > { %p1330_p10 = scmp.lt.u32.totalorder %s1328_s10, %s1324_s23  ;;  %p1332_p12 = scmp.lt.u32.totalorder %s1324_s23, %s1761_s18 }
 0x28b   : > { %p1326_p7 = pnand %p1325_p4, %p1468_p5 }
 0x28c   : > { %p1331_p11 = por %p1330_p10, %p1329_p9 }
 0x28d   : > { %p1327_p8 = pneg %p1326_p7 }
 0x28e   : > { %p1333_p13 = por %p1332_p12, %p1331_p11 }
 0x290   : > { %p1334_p0 = pnand %p1333_p13, %p1327_p8 }
 0x292   : > { %1337 = shalt.err (!%p1334_p0)
}
 0x293   : > { %s1384_s20 = smov 256  }
 0x294   : > { %1218 = dma.vmem_to_hbm [thread:$0]  (%p1468_p5), %s1756_s26, 512, %s1761_s18, %s1765_s19, %s1384_s20, %s1384_s20, %s1377_s17  }
 0x295 PF: > { %p1224_p1 = scmp.ge.s32.totalorder %s1372_s30, 2  ;;  %s1102_s9 = sand.u32 1, %s1360_s27  }
 0x296   : > { %s1103_s21 = scalar_lea.sflag [#allocation3], %s1102_s9 }
 0x297   : > { %p1221_p2 = pnand %p1224_p1, %p1472_p6 }
 0x299   : > { %1355 = dma.done.wait (!%p1221_p2), %s1103_s21, 512  }
 0x29a   : > { %1357 = vsyncadd (!%p1221_p2), %s1103_s21, 4294966784  ;;  %p18_p3 = scmp.ge.s32.totalorder %s1455_s11, 4   ;;  %s1842_s27 = smov %s1364_s28 }
 0x29b   : > { %s1843_s28 = smov %s1368_s29  ;;  %s1844_s29 = smov %s1466_s14 }
 0x29c   : > { %s1845_s30 = smov %s1455_s11  ;;  %20 = sbr.rel (!%p18_p3) target bundleno = 3 (0x3), region = 95 }
 0x2a3   :  { %1108 = vsyncpa [#allocation3], 1 }
 0x2a4   :  { %1110 = vsyncpa [#allocation3 + $0x1], 1 }

</bundles_post_ra>
